<compile_context>
chip_gen: v6e
topology: v6e:2x2x1
jax: 0.10.0
libtpu: 0.0.40
codegen_flags: <defaults>
</compile_context>

<pallas_src>
import functools

import jax
import jax.numpy as jnp
from jax.experimental import pallas as pl
from jax.experimental.pallas import tpu as pltpu

# ----------------------------- configuration --------------------------------
PATCH = 16          # ViT patch size
EMBED = 32          # ViT embed dim
MLP = 64            # ViT MLP hidden dim
DETAIL_CH = 8       # decoder detail-conv channels
FUSE_CH = 16        # decoder fusion channels
IN_CH = 4           # RGB + trimap

TILE_M = 1024       # row tile for the streamed ViT matmul kernels


def _round_up(x, m):
    return (x + m - 1) // m * m


def _vmem_limit_bytes():
    """Generation-dependent scoped-VMEM budget (v7x: 64MiB physical, v5e/v6e: 128MiB)."""
    try:
        cap = int(pltpu.get_tpu_info().vmem_capacity_bytes)
    except Exception:
        cap = 128 * 1024 * 1024
    return int(min(100 * 1024 * 1024, max(32 * 1024 * 1024, cap * 3 // 4)))


VMEM_LIMIT = _vmem_limit_bytes()

PIXEL_MEAN = jnp.array([123.675, 116.280, 103.530], jnp.float32).reshape(-1, 1, 1)
PIXEL_STD = jnp.array([58.395, 57.120, 57.375], jnp.float32).reshape(-1, 1, 1)
# NOTE: registered as buffers in the PyTorch module but not used in its forward().


def _pick_tile(m, target):
    """Largest row tile <= target that divides m (m is a multiple of 8 in this model)."""
    if m <= target:
        return m
    t = target - (target % 8)
    while t >= 8:
        if m % t == 0:
            return t
        t -= 8
    return m


def _pad_tokens(t):
    return _round_up(t, 128) if t >= 128 else _round_up(t, 8)


# ---------------------------- plain linear kernel ----------------------------
def _linear_kernel(x_ref, w_ref, b_ref, o_ref):
    x = x_ref[...].astype(w_ref.dtype)
    y = jnp.dot(x, w_ref[...], preferred_element_type=jnp.float32)
    o_ref[...] = (y + b_ref[...]).astype(o_ref.dtype)


def pallas_linear(x, w, b, *, out_dtype=jnp.float32, tile_m=TILE_M):
    """y = x @ w + b, streamed over M row-tiles; weights resident, bf16 MXU inputs."""
    M, K = x.shape
    _, N = w.shape
    tile = _pick_tile(M, tile_m)
    return pl.pallas_call(
        _linear_kernel,
        out_shape=jax.ShapeDtypeStruct((M, N), out_dtype),
        grid=(M // tile,),
        in_specs=[pl.BlockSpec((tile, K), lambda i: (i, 0)),
                  pl.BlockSpec((K, N), lambda i: (0, 0)),
                  pl.BlockSpec((1, N), lambda i: (0, 0))],
        out_specs=pl.BlockSpec((tile, N), lambda i: (i, 0)),
        compiler_params=pltpu.CompilerParams(
            dimension_semantics=("parallel",), vmem_limit_bytes=VMEM_LIMIT),
    )(x, w.astype(jnp.bfloat16), b.reshape(1, N).astype(jnp.float32))


# ------------------------- fused LN + QKV projection -------------------------
def _ln_qkv_kernel(x_ref, g_ref, be_ref, w_ref, b_ref, q_ref, k_ref, v_ref, *, d):
    x = x_ref[...].astype(jnp.float32)                # LN statistics in f32
    mu = jnp.mean(x, axis=-1, keepdims=True)
    var = jnp.mean(jnp.square(x - mu), axis=-1, keepdims=True)
    xn = (x - mu) * jax.lax.rsqrt(var + 1e-6)
    xn = xn * g_ref[...] + be_ref[...]
    y = jnp.dot(xn.astype(jnp.bfloat16), w_ref[...],
                preferred_element_type=jnp.float32) + b_ref[...]
    y = y.astype(q_ref.dtype)
    # split q/k/v in-VMEM (no wrapper-side XLA slices / HBM round trips)
    q_ref[...] = y[:, :d]
    k_ref[...] = y[:, d:2 * d]
    v_ref[...] = y[:, 2 * d:]


def ln_qkv_proj(x2d, g, be, wqkv, bqkv, *, tile_m=TILE_M):
    M, D = x2d.shape
    tile = _pick_tile(M, tile_m)
    return pl.pallas_call(
        functools.partial(_ln_qkv_kernel, d=D),
        out_shape=tuple(jax.ShapeDtypeStruct((M, D), jnp.bfloat16) for _ in range(3)),
        grid=(M // tile,),
        in_specs=[pl.BlockSpec((tile, D), lambda i: (i, 0)),
                  pl.BlockSpec((1, D), lambda i: (0, 0)),
                  pl.BlockSpec((1, D), lambda i: (0, 0)),
                  pl.BlockSpec((D, 3 * D), lambda i: (0, 0)),
                  pl.BlockSpec((1, 3 * D), lambda i: (0, 0))],
        out_specs=tuple(pl.BlockSpec((tile, D), lambda i: (i, 0)) for _ in range(3)),
        compiler_params=pltpu.CompilerParams(
            dimension_semantics=("parallel",), vmem_limit_bytes=VMEM_LIMIT),
    )(x2d, g.reshape(1, D).astype(jnp.float32), be.reshape(1, D).astype(jnp.float32),
      wqkv.astype(jnp.bfloat16), bqkv.reshape(1, 3 * D).astype(jnp.float32))


# ----------- flash attention (padded-key masking) + fused out-proj -----------
def _flash_kernel(q_ref, k_ref, v_ref, res_ref, wo_ref, bo_ref, o_ref,
                  m_sc, l_sc, acc_sc, *, kv_valid, tk):
    ki = pl.program_id(2)

    @pl.when(ki == 0)
    def _():
        m_sc[...] = jnp.full_like(m_sc, -jnp.inf)
        l_sc[...] = jnp.zeros_like(l_sc)
        acc_sc[...] = jnp.zeros_like(acc_sc)

    q = q_ref[0]                                      # 1/sqrt(D) already folded into wqkv
    k = k_ref[0]
    s = jax.lax.dot_general(q, k, (((1,), (1,)), ((), ())),
                            preferred_element_type=jnp.float32)
    if kv_valid is not None:                          # mask padded keys
        col = jax.lax.broadcasted_iota(jnp.int32, s.shape, 1) + ki * tk
        s = jnp.where(col < kv_valid, s, -1e30)

    m_prev = m_sc[...]
    m_new = jnp.maximum(m_prev, jnp.max(s, axis=-1, keepdims=True))
    alpha = jnp.exp(m_prev - m_new)
    p = jnp.exp(s - m_new)
    l_sc[...] = alpha * l_sc[...] + jnp.sum(p, axis=-1, keepdims=True)
    acc_sc[...] = alpha * acc_sc[...] + jnp.dot(p.astype(v_ref.dtype), v_ref[0],
                                                preferred_element_type=jnp.float32)
    m_sc[...] = m_new

    @pl.when(ki == pl.num_programs(2) - 1)
    def _():
        attn = acc_sc[...] * pl.reciprocal(l_sc[...], approx=True)
        proj = jnp.dot(attn.astype(jnp.bfloat16), wo_ref[...],
                       preferred_element_type=jnp.float32) + bo_ref[...]
        o_ref[0] = (proj + res_ref[0]).astype(o_ref.dtype)   # x + Proj(Attn(LN(x)))


def flash_attn_out_proj(q, k, v, res, wo, bo, *, kv_valid):
    N, T, D = q.shape
    TQ = 128 if T % 128 == 0 else T
    TK = 256 if T % 256 == 0 else TQ
    grid = (N, T // TQ, T // TK)
    kern = functools.partial(_flash_kernel, kv_valid=kv_valid, tk=TK)
    return pl.pallas_call(
        kern,
        out_shape=jax.ShapeDtypeStruct((N, T, D), jnp.float32),
        grid=grid,
        in_specs=[
            pl.BlockSpec((1, TQ, D), lambda n, qi, ki: (n, qi, 0)),
            pl.BlockSpec((1, TK, D), lambda n, qi, ki: (n, ki, 0)),
            pl.BlockSpec((1, TK, D), lambda n, qi, ki: (n, ki, 0)),
            pl.BlockSpec((1, TQ, D), lambda n, qi, ki: (n, qi, 0)),   # residual
            pl.BlockSpec((D, D), lambda n, qi, ki: (0, 0)),           # wo (resident)
            pl.BlockSpec((1, D), lambda n, qi, ki: (0, 0)),           # bo
        ],
        out_specs=pl.BlockSpec((1, TQ, D), lambda n, qi, ki: (n, qi, 0)),
        scratch_shapes=[pltpu.VMEM((TQ, 1), jnp.float32),
                        pltpu.VMEM((TQ, 1), jnp.float32),
                        pltpu.VMEM((TQ, D), jnp.float32)],
        compiler_params=pltpu.CompilerParams(
            dimension_semantics=("parallel", "parallel", "arbitrary"),
            vmem_limit_bytes=VMEM_LIMIT),
    )(q, k, v, res, wo.astype(jnp.bfloat16), bo.reshape(1, D).astype(jnp.float32))


# ------------------------- fused LN + MLP + residual --------------------------
def _ln_mlp_kernel(x_ref, g_ref, be_ref, w1_ref, b1_ref, w2_ref, b2_ref, o_ref):
    x = x_ref[...].astype(jnp.float32)
    mu = jnp.mean(x, axis=-1, keepdims=True)
    var = jnp.mean(jnp.square(x - mu), axis=-1, keepdims=True)
    xn = (x - mu) * jax.lax.rsqrt(var + 1e-6)
    xn = xn * g_ref[...] + be_ref[...]
    h = jnp.dot(xn.astype(jnp.bfloat16), w1_ref[...],
                preferred_element_type=jnp.float32) + b1_ref[...]
    # TODO(synk): tanh-approx GELU; PyTorch nn.GELU default is the exact erf form.
    h = jax.nn.gelu(h)
    y = jnp.dot(h.astype(jnp.bfloat16), w2_ref[...],
                preferred_element_type=jnp.float32) + b2_ref[...]
    o_ref[...] = (y + x).astype(o_ref.dtype)          # residual; hidden never touches HBM


def ln_mlp_residual(x2d, g, be, w1, b1, w2, b2, *, tile_m=TILE_M):
    M, D = x2d.shape
    H = w1.shape[1]
    tile = _pick_tile(M, tile_m)
    return pl.pallas_call(
        _ln_mlp_kernel,
        out_shape=jax.ShapeDtypeStruct((M, D), jnp.float32),
        grid=(M // tile,),
        in_specs=[pl.BlockSpec((tile, D), lambda i: (i, 0)),
                  pl.BlockSpec((1, D), lambda i: (0, 0)),
                  pl.BlockSpec((1, D), lambda i: (0, 0)),
                  pl.BlockSpec((D, H), lambda i: (0, 0)),
                  pl.BlockSpec((1, H), lambda i: (0, 0)),
                  pl.BlockSpec((H, D), lambda i: (0, 0)),
                  pl.BlockSpec((1, D), lambda i: (0, 0))],
        out_specs=pl.BlockSpec((tile, D), lambda i: (i, 0)),
        compiler_params=pltpu.CompilerParams(
            dimension_semantics=("parallel",), vmem_limit_bytes=VMEM_LIMIT),
    )(x2d, g.reshape(1, D).astype(jnp.float32), be.reshape(1, D).astype(jnp.float32),
      w1.astype(jnp.bfloat16), b1.reshape(1, H).astype(jnp.float32),
      w2.astype(jnp.bfloat16), b2.reshape(1, D).astype(jnp.float32))


# --------------------- fused decoder kernel (row-strip tiled) -----------------
def _decoder_kernel(img_hbm, low_ref, eh_ref, ew_ref,
                    wd_ref, bd_ref, wf_ref, bf_ref, wh_ref, bh_ref,
                    pha_ref, img_s, fused_s, copy_sem,
                    *, strip, wl, wp, hp, fw_p):
    """One (image, row-strip) per program: 3x3 detail conv + ReLU, nearest-upsample
    + 1x1 fuse + ReLU, 3x3 head + sigmoid — all in VMEM, with a 2-row halo."""
    n = pl.program_id(0)
    si = pl.program_id(1)
    r0 = si * strip

    # Overlapping halo strips can't be expressed with a blocked index_map, so the
    # image lives in HBM (pl.ANY) and the halo'd strip is DMA'd manually.
    cp = pltpu.make_async_copy(img_hbm.at[n, :, pl.ds(r0, strip + 4), :],
                               img_s, copy_sem.at[0])
    cp.start()
    cp.wait()

    # 0/1 mask of valid fused positions; the zero band *is* the head conv's zero
    # padding, so no full-scratch zero fill is needed.
    row_ids = jax.lax.broadcasted_iota(jnp.int32, (strip + 2, wl), 0) + (r0 - 1)
    col_ids = jax.lax.broadcasted_iota(jnp.int32, (strip + 2, wl), 1) - 1
    valid = ((row_ids >= 0) & (row_ids < hp) &
             (col_ids >= 0) & (col_ids < wp)).astype(jnp.float32)

    # ---- detail stream: 3x3 conv (IN_CH -> DETAIL_CH), zero pad 1, ReLU.
    # Shifted taps built once per (ic, dh, dw) and reused by every output channel;
    # the +/-1 lane shift rides the XLU via pltpu.roll (don't-care wrap columns
    # land beyond the valid width).
    acc = [jnp.full((strip + 2, wl), bd_ref[0, oc], jnp.float32)
           for oc in range(DETAIL_CH)]
    for ic in range(IN_CH):
        for dh in range(3):
            row = img_s[ic, dh:dh + strip + 2, :].astype(jnp.float32)
            for dw in range(3):
                tap = row if dw == 0 else pltpu.roll(row, shift=wl - dw, axis=1)
                for oc in range(DETAIL_CH):
                    acc[oc] = acc[oc] + wd_ref[oc, ic * 9 + dh * 3 + dw] * tap
    detail = [jnp.maximum(a, 0.0) for a in acc]

    # ---- fuse: nearest-upsampled ViT features (batched bf16 MXU matmuls) +
    # 1x1 detail contribution + bias, ReLU, halo masked to zero.
    rows_all = jnp.dot(eh_ref[0], low_ref[0],
                       preferred_element_type=jnp.float32).astype(jnp.bfloat16)
    ew = ew_ref[...]
    for oc in range(FUSE_CH):
        up = jnp.dot(rows_all[:, oc * fw_p:(oc + 1) * fw_p], ew,
                     preferred_element_type=jnp.float32)
        a = up + bf_ref[0, oc]
        for ic in range(DETAIL_CH):
            a = a + wf_ref[oc, ic] * detail[ic]
        fused_s[oc] = jnp.maximum(a, 0.0) * valid

    # ---- matting head: 3x3 conv (FUSE_CH -> 1), zero pad 1, sigmoid.
    hacc = jnp.full((strip, wl), bh_ref[0, 0], jnp.float32)
    for ic in range(FUSE_CH):
        for dh in range(3):
            row = fused_s[ic, dh:dh + strip, :]
            for dw in range(3):
                tap = row if dw == 0 else pltpu.roll(row, shift=wl - dw, axis=1)
                hacc = hacc + wh_ref[ic, dh * 3 + dw] * tap
    pha_ref[0, 0] = jax.nn.sigmoid(hacc)


def fused_decoder(img_dec, low_mat, eh_all, ew, wd, bd, wf, bf, wh, bh,
                  *, strip, wl, wp, hp, fw_p):
    N = img_dec.shape[0]
    n_strips = hp // strip
    fh_p = low_mat.shape[1]
    smem = pl.BlockSpec(memory_space=pltpu.MemorySpace.SMEM)
    kern = functools.partial(_decoder_kernel, strip=strip, wl=wl, wp=wp,
                             hp=hp, fw_p=fw_p)
    return pl.pallas_call(
        kern,
        out_shape=jax.ShapeDtypeStruct((N, 1, hp, wl), jnp.float32),
        grid=(N, n_strips),
        in_specs=[
            pl.BlockSpec(memory_space=pl.ANY),                               # image (HBM)
            pl.BlockSpec((1, fh_p, FUSE_CH * fw_p), lambda n, s: (n, 0, 0)),  # low-res feats
            pl.BlockSpec((1, strip + 2, fh_p), lambda n, s: (s, 0, 0)),       # row expansion
            pl.BlockSpec((fw_p, wl), lambda n, s: (0, 0)),                    # col expansion
            smem, smem, smem, smem, smem, smem,
        ],
        out_specs=pl.BlockSpec((1, 1, strip, wl), lambda n, s: (n, 0, s, 0)),
        scratch_shapes=[
            pltpu.VMEM((IN_CH, strip + 4, wl), jnp.bfloat16),   # halo'd image strip
            pltpu.VMEM((FUSE_CH, strip + 2, wl), jnp.float32),  # fused features (+1 halo)
            pltpu.SemaphoreType.DMA((1,)),
        ],
        compiler_params=pltpu.CompilerParams(
            dimension_semantics=("parallel", "parallel"),
            vmem_limit_bytes=VMEM_LIMIT),
    )(img_dec, low_mat, eh_all, ew, wd, bd, wf, bf, wh, bh)


# ----------------------------- model forward ---------------------------------
def vit_block(tokens, p, *, kv_valid):
    """Pre-LN transformer block as 3 fused Pallas kernels."""
    N, T, D = tokens.shape
    x2d = tokens.reshape(N * T, D)

    scale = 1.0 / float(D) ** 0.5                     # fold 1/sqrt(D) into wqkv / bqkv
    wqkv = jnp.concatenate([p["wqkv"][:, :D] * scale, p["wqkv"][:, D:]], axis=1)
    bqkv = jnp.concatenate([p["bqkv"][:D] * scale, p["bqkv"][D:]], axis=0)

    q, k, v = ln_qkv_proj(x2d, p["g1"], p["be1"], wqkv, bqkv)
    q = q.reshape(N, T, D)
    k = k.reshape(N, T, D)
    v = v.reshape(N, T, D)

    x = flash_attn_out_proj(q, k, v, tokens, p["wo"], p["bo"], kv_valid=kv_valid)
    y = ln_mlp_residual(x.reshape(N * T, D), p["g2"], p["be2"],
                        p["w1"], p["b1"], p["w2"], p["b2"])
    return y.reshape(N, T, D)


def backbone_forward(p, images):
    """ViT-style backbone: patch embed + one transformer block.  Returns the
    (token-padded) feature map (N, Ttok_pad, EMBED) and the real token count."""
    N, C, Hp, Wp = images.shape
    ph, pw = Hp // PATCH, Wp // PATCH
    n_tok = ph * pw
    tok_p = _pad_tokens(n_tok)

    x = images.reshape(N, C, ph, PATCH, pw, PATCH).transpose(0, 2, 4, 1, 3, 5)
    x = x.reshape(N, n_tok, C * PATCH * PATCH)
    if tok_p != n_tok:
        # pad the token axis ONCE; padded rows ride through the whole ViT block
        # (padded keys are masked in attention) and are dropped at the end.
        x = jnp.pad(x, ((0, 0), (0, tok_p - n_tok), (0, 0)))
    x = x.reshape(N * tok_p, C * PATCH * PATCH).astype(jnp.bfloat16)

    tok = pallas_linear(x, p["patch_w"], p["patch_b"], out_dtype=jnp.float32)
    tok = tok.reshape(N, tok_p, EMBED)
    tok = vit_block(tok, p, kv_valid=None if tok_p == n_tok else n_tok)
    return tok, n_tok


def decoder_forward(p, features_tok, images, n_tok):
    """Detail_Capture-style decoder (non-recurrent), fused in one strip-tiled kernel."""
    N, C, Hp, Wp = images.shape
    fh, fw = Hp // PATCH, Wp // PATCH
    tok_p = features_tok.shape[1]

    # ViT-feature half of the 1x1 fuse conv at LOW resolution (commutes with the
    # nearest-neighbour upsample); only the tiny low-res map goes back to HBM.
    low = pallas_linear(features_tok.reshape(N * tok_p, EMBED),
                        p["fuse_w"][:EMBED, :],
                        jnp.zeros((FUSE_CH,), jnp.float32),
                        out_dtype=jnp.float32)
    low = low.reshape(N, tok_p, FUSE_CH)[:, :n_tok, :].reshape(N, fh, fw, FUSE_CH)

    strip = 64 if Hp % 64 == 0 else 32          # Hp is always a multiple of 32
    wl = _round_up(Wp + 4, 128)                 # lane-aligned halo'd width
    fh_p = _round_up(fh, 8)
    fw_p = _round_up(fw, 128)
    n_strips = Hp // strip

    # pack low-res features as (fh_p, FUSE_CH*fw_p) so the row-upsample is a
    # single bf16 MXU matmul per strip.
    low = jnp.transpose(low, (0, 1, 3, 2))                        # (N, fh, FUSE_CH, fw)
    low = jnp.pad(low, ((0, 0), (0, fh_p - fh), (0, 0), (0, fw_p - fw)))
    low_mat = low.reshape(N, fh_p, FUSE_CH * fw_p).astype(jnp.bfloat16)

    # one-hot nearest-upsample expansion matrices (exact in bf16)
    rows = (jnp.arange(n_strips)[:, None, None] * strip - 1
            + jnp.arange(strip + 2)[None, :, None])
    fr = jnp.arange(fh_p)[None, None, :]
    eh_all = (((rows >= 0) & (rows < Hp)) & (rows // PATCH == fr)).astype(jnp.bfloat16)
    cc = jnp.arange(wl)[None, :] - 1
    fc = jnp.arange(fw_p)[:, None]
    ew = (((cc >= 0) & (cc < Wp)) & (cc // PATCH == fc)).astype(jnp.bfloat16)

    # 2-pixel zero halo + lane-aligned width, bf16 to halve HBM image traffic
    img_dec = jnp.pad(images.astype(jnp.bfloat16),
                      ((0, 0), (0, 0), (2, 2), (2, wl - Wp - 2)))

    wd = p["conv_d_w"].reshape(DETAIL_CH, IN_CH * 9)
    wf_det = jnp.transpose(p["fuse_w"][EMBED:, :])                # (FUSE_CH, DETAIL_CH)
    wh = p["head_w"].reshape(FUSE_CH, 9)

    phas = fused_decoder(img_dec, low_mat, eh_all, ew,
                         wd, p["conv_d_b"].reshape(1, DETAIL_CH),
                         wf_det, p["fuse_b"].reshape(1, FUSE_CH),
                         wh, p["head_b"].reshape(1, 1),
                         strip=strip, wl=wl, wp=Wp, hp=Hp, fw_p=fw_p)
    return {"phas": phas}        # (N, 1, Hp, wl); caller crops to (H, W)


def preprocess_inputs(batched_inputs):
    """Mirror of ViTMatte.preprocess_inputs (pad and batch)."""
    images = batched_inputs["image"]      # [B, T, 3, H, W]
    trimap = batched_inputs["trimap"]     # [B, T, 1, H, W]
    B, T = images.shape[:2]
    images = images.reshape((B * T,) + images.shape[2:])
    trimap = trimap.reshape((B * T,) + trimap.shape[2:])
    if "fg" in batched_inputs:
        trimap = jnp.where(trimap < 85, 0.0,
                           jnp.where(trimap >= 170, 1.0, 0.5))
    images = jnp.concatenate([images, trimap], axis=1)            # [B*T, 4, H, W]
    N, C, H, W = images.shape
    if H % 32 != 0 or W % 32 != 0:
        new_H = 32 - H % 32 + H
        new_W = 32 - W % 32 + W
        padded = jnp.zeros((N, C, new_H, new_W), images.dtype)
        padded = padded.at[:, :, :H, :W].set(images)
        images = padded
    phas = batched_inputs.get("alpha", None)
    return images, dict(phas=phas), H, W, B, T


def vitmatte_forward(params, batched_inputs):
    images, _targets, H, W, B, T = preprocess_inputs(batched_inputs)
    features, n_tok = backbone_forward(params, images)            # (N, Ttok_pad, EMBED)
    trimap = images[:, 3:4, :H, :W].reshape(B, T, 1, H, W)
    outputs = decoder_forward(params, features, images, n_tok)
    pha = outputs["phas"][:, :, :H, :W].reshape(B, T, 1, H, W)
    return {"pha": pha, "trimap": trimap}


# ----------------------------- parameter init --------------------------------
def init_params(key):
    ks = jax.random.split(key, 8)

    def w(k, shape, scale):
        return jax.random.normal(k, shape, jnp.float32) * scale

    D, Dm, P = EMBED, MLP, PATCH
    return {
        "patch_w": w(ks[0], (IN_CH * P * P, D), 0.02),
        "patch_b": jnp.zeros((D,), jnp.float32),
        "wqkv": w(ks[1], (D, 3 * D), 0.02),
        "bqkv": jnp.zeros((3 * D,), jnp.float32),
        "wo": w(ks[2], (D, D), 0.02),
        "bo": jnp.zeros((D,), jnp.float32),
        "w1": w(ks[3], (D, Dm), 0.02),
        "b1": jnp.zeros((Dm,), jnp.float32),
        "w2": w(ks[4], (Dm, D), 0.02),
        "b2": jnp.zeros((D,), jnp.float32),
        "g1": jnp.ones((D,), jnp.float32), "be1": jnp.zeros((D,), jnp.float32),
        "g2": jnp.ones((D,), jnp.float32), "be2": jnp.zeros((D,), jnp.float32),
        "conv_d_w": w(ks[5], (DETAIL_CH, IN_CH, 3, 3), 0.05),
        "conv_d_b": jnp.zeros((DETAIL_CH,), jnp.float32),
        "fuse_w": w(ks[6], (EMBED + DETAIL_CH, FUSE_CH), 0.05),
        "fuse_b": jnp.zeros((FUSE_CH,), jnp.float32),
        "head_w": w(ks[7], (FUSE_CH, 3, 3), 0.05),
        "head_b": jnp.zeros((1,), jnp.float32),
    }


# ----------------------------- main ------------------------------------------
if __name__ == "__main__":
    key = jax.random.PRNGKey(0)
    kp, ki, kt = jax.random.split(key, 3)

    B, T, H, W = 2, 2, 30, 30   # H,W not a multiple of 32 -> exercises the padding path
    params = init_params(kp)

    batched_inputs = {
        "image": jax.random.uniform(ki, (B, T, 3, H, W), jnp.float32),
        "trimap": jax.random.uniform(kt, (B, T, 1, H, W), jnp.float32),
    }

    out = vitmatte_forward(params, batched_inputs)
    pha = jax.block_until_ready(out["pha"])
    trimap = jax.block_until_ready(out["trimap"])

    assert pha.shape == (B, T, 1, H, W), pha.shape
    assert trimap.shape == (B, T, 1, H, W), trimap.shape
    assert bool(jnp.all(jnp.isfinite(pha)))
    assert bool(jnp.all((pha >= 0.0) & (pha <= 1.0)))   # sigmoid head

    print("KERNEL_OK")
</pallas_src>

<mosaic_0001>
module attributes {stable_mosaic.version = 11 : i64} {
  func.func @_linear_kernel(%arg0: i32, %arg1: memref<32x1024xbf16, #tpu.memory_space<vmem>>, %arg2: memref<1024x32xbf16, #tpu.memory_space<vmem>>, %arg3: memref<1x32xf32, #tpu.memory_space<vmem>>, %arg4: memref<32x32xf32, #tpu.memory_space<vmem>>) attributes {dimension_semantics = [#tpu.dimension_semantics<parallel>], iteration_bounds = array<i64: 1>, scalar_prefetch = 0 : i64, scratch_operands = 0 : i64, tpu.core_type = #tpu.core_type<tc>, window_params = [{transform_indices = @transform_0, window_bounds = array<i64: 32, 1024>}, {pipeline_mode = #tpu.pipeline_mode<synchronous>, transform_indices = @transform_1, window_bounds = array<i64: 1024, 32>}, {pipeline_mode = #tpu.pipeline_mode<synchronous>, transform_indices = @transform_2, window_bounds = array<i64: 1, 32>}, {transform_indices = @transform_3, window_bounds = array<i64: 32, 32>}]} {
    %c0 = arith.constant 0 : index
    %c0_0 = arith.constant 0 : index
    %0 = vector.load %arg1[%c0, %c0_0] : memref<32x1024xbf16, #tpu.memory_space<vmem>>, vector<32x1024xbf16>
    %c0_1 = arith.constant 0 : index
    %c0_2 = arith.constant 0 : index
    %1 = vector.load %arg2[%c0_1, %c0_2] : memref<1024x32xbf16, #tpu.memory_space<vmem>>, vector<1024x32xbf16>
    %cst = arith.constant dense<0.000000e+00> : vector<32x32xf32>
    %2 = tpu.matmul %0, %1, %cst {dimension_numbers = #tpu.dot_dimension_numbers<[1], [0], [0], [1], [0, 0, 1, 1], [], []>} : vector<32x1024xbf16>, vector<1024x32xbf16>, vector<32x32xf32> -> vector<32x32xf32>
    %c0_3 = arith.constant 0 : index
    %c0_4 = arith.constant 0 : index
    %3 = vector.load %arg3[%c0_3, %c0_4] : memref<1x32xf32, #tpu.memory_space<vmem>>, vector<1x32xf32>
    %4 = vector.broadcast %3 : vector<1x32xf32> to vector<32x32xf32>
    %5 = arith.addf %2, %4 : vector<32x32xf32>
    %c0_5 = arith.constant 0 : index
    %c0_6 = arith.constant 0 : index
    %6 = vector.load %arg4[%c0_5, %c0_6] : memref<32x32xf32, #tpu.memory_space<vmem>>, vector<32x32xf32>
    tpu.vector_store %arg4[%c0_5, %c0_6], %5 {strides = array<i32>} : memref<32x32xf32, #tpu.memory_space<vmem>>, vector<32x32xf32>,
    return
  }
  func.func @transform_0(%arg0: i32) -> (i32, i32) {
    %c0_i32 = arith.constant 0 : i32
    %c0_i32_0 = arith.constant 0 : i32
    return %arg0, %c0_i32 : i32, i32
  }
  func.func @transform_1(%arg0: i32) -> (i32, i32) {
    %c0_i32 = arith.constant 0 : i32
    %c0_i32_0 = arith.constant 0 : i32
    %c0_i32_1 = arith.constant 0 : i32
    return %c0_i32, %c0_i32_0 : i32, i32
  }
  func.func @transform_2(%arg0: i32) -> (i32, i32) {
    %c0_i32 = arith.constant 0 : i32
    %c0_i32_0 = arith.constant 0 : i32
    %c0_i32_1 = arith.constant 0 : i32
    return %c0_i32, %c0_i32_0 : i32, i32
  }
  func.func @transform_3(%arg0: i32) -> (i32, i32) {
    %c0_i32 = arith.constant 0 : i32
    %c0_i32_0 = arith.constant 0 : i32
    return %arg0, %c0_i32 : i32, i32
  }
}

</mosaic_0001>

<bundles_post_ra>
// kernel: tpu_custom_call.1
= control target key start
LH: loop header
LB: loop body
LE: loop exit
PB: predicated region body
PF: predicated region fallthrough
CT: control target
= control target key end

     0   :  { %s1403_s0 = inlined_call_operand.vmem [shape: bf16[32,1024], index: 0, kind: input, shape index: {}]   ;;  %s1404_s1 = inlined_call_operand.vmem [shape: bf16[1024,32], index: 1, kind: input, shape index: {}]   ;;  %s1405_s2 = inlined_call_operand.vmem [shape: f32[1,32], index: 2, kind: input, shape index: {}]   ;;  %s1406_s3 = inlined_call_operand.hbm [shape: f32[32,32], index: 3, kind: output, shape index: {}]  }
   0x1   :  { %v1044_v0 = vld [vmem:[%s1404_s1 + $0x78] sm:$0xff]   ;;  %v1048_v4 = vld [vmem:[%s1404_s1 + $0x70] sm:$0xff]   ;;  %v1052_v8 = vld [vmem:[%s1404_s1 + $0x68] sm:$0xff]  }
   0x2   :  { %v1045_v1 = vld [vmem:[%s1404_s1 + $0xf8] sm:$0xff]   ;;  %929 = vmatprep.subr.bf16.mxu0 %v1044_v0  ;;  %v1049_v5 = vld [vmem:[%s1404_s1 + $0xf0] sm:$0xff]   ;;  %v1053_v9 = vld [vmem:[%s1404_s1 + $0xe8] sm:$0xff]  }
   0x3   :  { %v1046_v2 = vld [vmem:[%s1404_s1 + $0x38] sm:$0xff]   ;;  %957 = vmatprep.subr.bf16.mxu1 %v1045_v1  ;;  %v1050_v6 = vld [vmem:[%s1404_s1 + $0x30] sm:$0xff]   ;;  %v1054_v10 = vld [vmem:[%s1404_s1 + $0x28] sm:$0xff]  }
   0x4   :  { %v1047_v3 = vld [vmem:[%s1404_s1 + $0xb8] sm:$0xff]   ;;  %930 = vmatpush3.bf16.msra.mxu0 %v1046_v2  ;;  %v1051_v7 = vld [vmem:[%s1404_s1 + $0xb0] sm:$0xff]   ;;  %v1055_v11 = vld [vmem:[%s1404_s1 + $0xa8] sm:$0xff]  }
   0x5   :  { %958 = vmatpush3.bf16.msra.mxu1 %v1047_v3  ;;  %931 = vmatprep.subr.bf16.mxu0 %v1048_v4  ;;  %v1056_v12 = vld [vmem:[%s1404_s1 + $0x60] sm:$0xff]   ;;  %v1060_v16 = vld [vmem:[%s1404_s1 + $0x58] sm:$0xff]   ;;  %v1064_v20 = vld [vmem:[%s1404_s1 + $0x50] sm:$0xff]  }
   0x6   :  { %959 = vmatprep.subr.bf16.mxu1 %v1049_v5  ;;  %v1057_v13 = vld [vmem:[%s1404_s1 + $0xe0] sm:$0xff]   ;;  %v1061_v17 = vld [vmem:[%s1404_s1 + $0xd8] sm:$0xff]   ;;  %v1065_v21 = vld [vmem:[%s1404_s1 + $0xd0] sm:$0xff]  }
   0x7   :  { %v1058_v14 = vld [vmem:[%s1404_s1 + $0x20] sm:$0xff]   ;;  %v1062_v18 = vld [vmem:[%s1404_s1 + $0x18] sm:$0xff]   ;;  %v1066_v22 = vld [vmem:[%s1404_s1 + $0x10] sm:$0xff]  }
   0x8   :  { %932 = vmatpush3.bf16.msra.mxu0 %v1050_v6  ;;  %v1059_v15 = vld [vmem:[%s1404_s1 + $0xa0] sm:$0xff]   ;;  %v1063_v19 = vld [vmem:[%s1404_s1 + $0x98] sm:$0xff]   ;;  %v1067_v23 = vld [vmem:[%s1404_s1 + $0x90] sm:$0xff]  }
   0x9   :  { %960 = vmatpush3.bf16.msra.mxu1 %v1051_v7  ;;  %933 = vmatprep.subr.bf16.mxu0 %v1052_v8  ;;  %v1068_v24 = vld [vmem:[%s1404_s1 + $0x48] sm:$0xff]   ;;  %v1072_v28 = vld [vmem:[%s1404_s1 + $0x40] sm:$0xff]   ;;  %v1076_v40 = vld [vmem:[%s1404_s1 + $0x178] sm:$0xff]  }
   0xa   :  { %961 = vmatprep.subr.bf16.mxu1 %v1053_v9  ;;  %v1069_v25 = vld [vmem:[%s1404_s1 + $0xc8] sm:$0xff]   ;;  %v1073_v29 = vld [vmem:[%s1404_s1 + $0xc0] sm:$0xff]   ;;  %v1077_v41 = vld [vmem:[%s1404_s1 + $0x1f8] sm:$0xff]  }
   0xb   :  { %v1070_v26 = vld [vmem:[%s1404_s1 + $0x8] sm:$0xff]   ;;  %v1074_v30 = vld [vmem:[%s1404_s1] sm:$0xff]   ;;  %v1078_v42 = vld [vmem:[%s1404_s1 + $0x138] sm:$0xff]  }
   0xc   :  { %934 = vmatpush3.bf16.msra.mxu0 %v1054_v10  ;;  %v1071_v27 = vld [vmem:[%s1404_s1 + $0x88] sm:$0xff]   ;;  %v1075_v31 = vld [vmem:[%s1404_s1 + $0x80] sm:$0xff]   ;;  %v1079_v43 = vld [vmem:[%s1404_s1 + $0x1b8] sm:$0xff]  }
   0xd   :  { %962 = vmatpush3.bf16.msra.mxu1 %v1055_v11  ;;  %935 = vmatprep.subr.bf16.mxu0 %v1056_v12  ;;  %v16_v32 = vld [vmem:[%s1403_s0] sm:$0xff]  ;;  %v17_v34 = vld [vmem:[%s1403_s0 + $0x8] sm:$0xff]  ;;  %v1080_v44 = vld [vmem:[%s1404_s1 + $0x170] sm:$0xff]  }
   0xe   :  { %963 = vmatprep.subr.bf16.mxu1 %v1057_v13  ;;  %v20_v33 = vld [vmem:[%s1403_s0 + $0x20] sm:$0xff]  ;;  %v21_v37 = vld [vmem:[%s1403_s0 + $0x28] sm:$0xff]  ;;  %v1081_v45 = vld [vmem:[%s1404_s1 + $0x1f0] sm:$0xff]  }
   0xf   :  { %v849_v35 = vcombine.low %v16_v32, %v20_v33  ;;  %v850_v36 = vcombine.high %v16_v32, %v20_v33  ;;  %v851_v38 = vcombine.low %v17_v34, %v21_v37  ;;  %v852_v39 = vcombine.high %v17_v34, %v21_v37  ;;  %v1082_v46 = vld [vmem:[%s1404_s1 + $0x130] sm:$0xff]   ;;  %v1084_v48 = vld [vmem:[%s1404_s1 + $0x168] sm:$0xff]   ;;  %v1088_v52 = vld [vmem:[%s1404_s1 + $0x160] sm:$0xff]  }
  0x10   :  { %936 = vmatpush3.bf16.msra.mxu0 %v1058_v14  ;;  %v1083_v47 = vld [vmem:[%s1404_s1 + $0x1b0] sm:$0xff]   ;;  %v1085_v49 = vld [vmem:[%s1404_s1 + $0x1e8] sm:$0xff]   ;;  %v1089_v53 = vld [vmem:[%s1404_s1 + $0x1e0] sm:$0xff]  }
  0x11   :  { %964 = vmatpush3.bf16.msra.mxu1 %v1059_v15  ;;  %937 = vmatprep.subr.bf16.mxu0 %v1060_v16  ;;  %v1086_v50 = vld [vmem:[%s1404_s1 + $0x128] sm:$0xff]   ;;  %v1090_v54 = vld [vmem:[%s1404_s1 + $0x120] sm:$0xff]   ;;  %v1092_v56 = vld [vmem:[%s1404_s1 + $0x158] sm:$0xff]  }
  0x12   :  { %965 = vmatprep.subr.bf16.mxu1 %v1061_v17  ;;  %663 = vmatprep.mubr.bf16.mxu0 %v850_v36  ;;  %v1087_v51 = vld [vmem:[%s1404_s1 + $0x1a8] sm:$0xff]   ;;  %v1091_v55 = vld [vmem:[%s1404_s1 + $0x1a0] sm:$0xff]   ;;  %v1093_v57 = vld [vmem:[%s1404_s1 + $0x1d8] sm:$0xff]  }
  0x13   :  { %712 = vmatprep.mubr.bf16.mxu1 %v852_v39  ;;  %v24_v58 = vld [vmem:[%s1403_s0 + $0x40] sm:$0xff]  ;;  %v1094_v61 = vld [vmem:[%s1404_s1 + $0x118] sm:$0xff]   ;;  %v25_v0 = vld [vmem:[%s1403_s0 + $0x48] sm:$0xff] }
  0x14   :  { %938 = vmatpush3.bf16.msra.mxu0 %v1062_v18  ;;  %v28_v59 = vld [vmem:[%s1403_s0 + $0x60] sm:$0xff]  ;;  %v1095_v63 = vld [vmem:[%s1404_s1 + $0x198] sm:$0xff]   ;;  %v29_v1 = vld [vmem:[%s1403_s0 + $0x68] sm:$0xff] }
  0x15   :  { %966 = vmatpush3.bf16.msra.mxu1 %v1063_v19  ;;  %939 = vmatprep.subr.bf16.mxu0 %v1064_v20  ;;  %v858_v60 = vcombine.high %v24_v58, %v28_v59  ;;  %v857_v62 = vcombine.low %v24_v58, %v28_v59  ;;  %v860_v2 = vcombine.high %v25_v0, %v29_v1  ;;  %v1096_v4 = vld [vmem:[%s1404_s1 + $0x150] sm:$0xff]   ;;  %v1100_v8 = vld [vmem:[%s1404_s1 + $0x148] sm:$0xff]   ;;  %v1104_v12 = vld [vmem:[%s1404_s1 + $0x140] sm:$0xff]  }
  0x16   :  { %967 = vmatprep.subr.bf16.mxu1 %v1065_v21  ;;  %v859_v3 = vcombine.low %v25_v0, %v29_v1  ;;  %v1097_v5 = vld [vmem:[%s1404_s1 + $0x1d0] sm:$0xff]   ;;  %v1101_v9 = vld [vmem:[%s1404_s1 + $0x1c8] sm:$0xff]   ;;  %v1105_v13 = vld [vmem:[%s1404_s1 + $0x1c0] sm:$0xff]  }
  0x17   :  { %v1098_v6 = vld [vmem:[%s1404_s1 + $0x110] sm:$0xff]   ;;  %v1102_v10 = vld [vmem:[%s1404_s1 + $0x108] sm:$0xff]   ;;  %v1106_v14 = vld [vmem:[%s1404_s1 + $0x100] sm:$0xff]  }
  0x18   :  { %940 = vmatpush3.bf16.msra.mxu0 %v1066_v22  ;;  %v1099_v7 = vld [vmem:[%s1404_s1 + $0x190] sm:$0xff]   ;;  %v1103_v11 = vld [vmem:[%s1404_s1 + $0x188] sm:$0xff]   ;;  %v1107_v15 = vld [vmem:[%s1404_s1 + $0x180] sm:$0xff]  }
  0x19   :  { %968 = vmatpush3.bf16.msra.mxu1 %v1067_v23  ;;  %941 = vmatprep.subr.bf16.mxu0 %v1068_v24  ;;  %v18_v16 = vld [vmem:[%s1403_s0 + $0x10] sm:$0xff]  ;;  %v19_v18 = vld [vmem:[%s1403_s0 + $0x18] sm:$0xff] }
  0x1a   :  { %969 = vmatprep.subr.bf16.mxu1 %v1069_v25  ;;  %v22_v17 = vld [vmem:[%s1403_s0 + $0x30] sm:$0xff]  ;;  %v23_v19 = vld [vmem:[%s1403_s0 + $0x38] sm:$0xff] }
  0x1b   :  { %v853_v20 = vcombine.low %v18_v16, %v22_v17  ;;  %v854_v21 = vcombine.high %v18_v16, %v22_v17  ;;  %v855_v22 = vcombine.low %v19_v18, %v23_v19  ;;  %v856_v23 = vcombine.high %v19_v18, %v23_v19  ;;  %v26_v24 = vld [vmem:[%s1403_s0 + $0x50] sm:$0xff] }
  0x1c   :  { %942 = vmatpush3.bf16.msra.mxu0 %v1070_v26  ;;  %v30_v25 = vld [vmem:[%s1403_s0 + $0x70] sm:$0xff]  ;;  %v27_v26 = vld [vmem:[%s1403_s0 + $0x58] sm:$0xff] }
  0x1d   :  { %970 = vmatpush3.bf16.msra.mxu1 %v1071_v27  ;;  %943 = vmatprep.subr.bf16.mxu0 %v1072_v28  ;;  %v862_v27 = vcombine.high %v26_v24, %v30_v25  ;;  %v31_v28 = vld [vmem:[%s1403_s0 + $0x78] sm:$0xff] }
  0x1e   :  { %971 = vmatprep.subr.bf16.mxu1 %v1073_v29 }
  0x20   :  { %944 = vmatpush3.bf16.msra.mxu0 %v1074_v30 }
  0x21   :  { %972 = vmatpush3.bf16.msra.mxu1 %v1075_v31  ;;  %985 = vmatprep.subr.bf16.mxu0 %v1076_v40 }
  0x22   :  { %1013 = vmatprep.subr.bf16.mxu1 %v1077_v41 }
  0x23   :  { %664 = vmatmul.mubr.bf16.vlgmr.msra.gmra.mxu0 %v849_v35 }
  0x24   :  { %713 = vmatmul.mubr.bf16.vlgmr.msra.gmra.mxu1 %v851_v38  ;;  %986 = vmatpush3.bf16.msra.mxu0 %v1078_v42 }
  0x25   :  { %1014 = vmatpush3.bf16.msra.mxu1 %v1079_v43  ;;  %987 = vmatprep.subr.bf16.mxu0 %v1080_v44 }
  0x26   :  { %1015 = vmatprep.subr.bf16.mxu1 %v1081_v45  ;;  %671 = vmatprep.mubr.bf16.mxu0 %v858_v60 }
  0x27   :  { %720 = vmatprep.mubr.bf16.mxu1 %v860_v2 }
  0x28   :  { %988 = vmatpush3.bf16.msra.mxu0 %v1082_v46 }
  0x29   :  { %1016 = vmatpush3.bf16.msra.mxu1 %v1083_v47  ;;  %989 = vmatprep.subr.bf16.mxu0 %v1084_v48 }
  0x2a   :  { %1017 = vmatprep.subr.bf16.mxu1 %v1085_v49 }
  0x2b   :  { %672 = vmatmul.mubr.bf16.gmra.mxu0 %v857_v62 }
  0x2c   :  { %990 = vmatpush3.bf16.msra.mxu0 %v1086_v50  ;;  %721 = vmatmul.mubr.bf16.gmra.mxu1 %v859_v3 }
  0x2d   :  { %1018 = vmatpush3.bf16.msra.mxu1 %v1087_v51  ;;  %991 = vmatprep.subr.bf16.mxu0 %v1088_v52 }
  0x2e   :  { %1019 = vmatprep.subr.bf16.mxu1 %v1089_v53 }
  0x30   :  { %992 = vmatpush3.bf16.msra.mxu0 %v1090_v54 }
  0x31   :  { %1020 = vmatpush3.bf16.msra.mxu1 %v1091_v55  ;;  %993 = vmatprep.subr.bf16.mxu0 %v1092_v56 }
  0x32   :  { %1021 = vmatprep.subr.bf16.mxu1 %v1093_v57 }
  0x34   :  { %994 = vmatpush3.bf16.msra.mxu0 %v1094_v61 }
  0x35   :  { %1022 = vmatpush3.bf16.msra.mxu1 %v1095_v63  ;;  %995 = vmatprep.subr.bf16.mxu0 %v1096_v4 }
  0x36   :  { %1023 = vmatprep.subr.bf16.mxu1 %v1097_v5 }
  0x38   :  { %996 = vmatpush3.bf16.msra.mxu0 %v1098_v6 }
  0x39   :  { %1024 = vmatpush3.bf16.msra.mxu1 %v1099_v7  ;;  %997 = vmatprep.subr.bf16.mxu0 %v1100_v8 }
  0x3a   :  { %1025 = vmatprep.subr.bf16.mxu1 %v1101_v9 }
  0x3c   :  { %998 = vmatpush3.bf16.msra.mxu0 %v1102_v10 }
  0x3d   :  { %1026 = vmatpush3.bf16.msra.mxu1 %v1103_v11  ;;  %999 = vmatprep.subr.bf16.mxu0 %v1104_v12 }
  0x3e   :  { %1027 = vmatprep.subr.bf16.mxu1 %v1105_v13 }
  0x40   :  { %1000 = vmatpush3.bf16.msra.mxu0 %v1106_v14 }
  0x41   :  { %1028 = vmatpush3.bf16.msra.mxu1 %v1107_v15 }
  0x42   :  { %8 = vsyncpa [#allocation3], 0  ;;  %761 = vmatprep.mubr.bf16.mxu0 %v854_v21  ;;  %810 = vmatprep.mubr.bf16.mxu1 %v856_v23  ;;  %v864_v29 = vcombine.high %v27_v26, %v31_v28  ;;  %v861_v30 = vcombine.low %v26_v24, %v30_v25  ;;  %v863_v31 = vcombine.low %v27_v26, %v31_v28  ;;  %v848_v47 = vld [vmem:[%s1405_s2] ss:$0 sm:$0xff]  ;;  %vm827_vm0 = vcmask 261120   ;;  %s1130_s2 = smov [#allocation2]  }
  0x43   :  { %762 = vmatmul.mubr.bf16.vlgmr.msra.gmra.mxu0 %v853_v20  ;;  %s837_s10 = sshll.u32 %s1130_s2, 4  ;;  %s838_s10 = int_to_ptr.vmem [resolvable:$true] %s837_s10 }
  0x44   :  { %811 = vmatmul.mubr.bf16.vlgmr.msra.gmra.mxu1 %v855_v22  ;;  %769 = vmatprep.mubr.bf16.mxu0 %v862_v27  ;;  %s1108_s11 = scalar_lea.vmem %s838_s10, 512  ;;  %p1113_p1 = scmp.lt.s32.totalorder %s838_s10, %s838_s10 }
  0x45   :  { %818 = vmatprep.mubr.bf16.mxu1 %v864_v29  ;;  %p1109_p0 = scmp.ne.s32.totalorder %s838_s10, %s1108_s11  ;;  %p1114_p2 = scmp.lt.s32.totalorder %s1108_s11, %s1108_s11 }
  0x47   :  { %p1115_p3 = por %p1114_p2, %p1113_p1 }
  0x49   :  { %p1116_p4 = pnand %p1115_p3, %p1109_p0 }
  0x4b   :  { %770 = vmatmul.mubr.bf16.gmra.mxu0 %v861_v30 }
  0x4c   :  { %819 = vmatmul.mubr.bf16.gmra.mxu1 %v863_v31 }
  0xe3   :  { %v945_v32 = vpop.f32.mrf.mxu0 }
  0xe4   :  { %v973_v33 = vpop.f32.mrf.mxu1 }
  0xe5   :  { %v946_v34 = vpop.f32.mrf.mxu0 }
  0xe6   :  { %v974_v35 = vpop.f32.mrf.mxu1  ;;  %v947_v46 = vadd.f32 %v946_v34, %v945_v32 }
  0xe7   :  { %v948_v36 = vpop.f32.mrf.mxu0  ;;  %v975_v51 = vadd.f32 %v974_v35, %v973_v33 }
  0xe8   :  { %v976_v37 = vpop.f32.mrf.mxu1  ;;  %v666_v50 = vadd.f32 %v947_v46, %v848_v47 }
  0xe9   :  { %v949_v38 = vpop.f32.mrf.mxu0 }
  0xea   :  { %v977_v39 = vpop.f32.mrf.mxu1  ;;  %v950_v52 = vadd.f32 %v949_v38, %v948_v36  ;;  %v715_v58 = vadd.f32 %v975_v51, %v666_v50 }
  0xeb   :  { %v951_v40 = vpop.f32.mrf.mxu0  ;;  %v978_v63 = vadd.f32 %v977_v39, %v976_v37 }
  0xec   :  { %v979_v41 = vpop.f32.mrf.mxu1  ;;  %v669_v59 = vadd.f32 %v950_v52, %v848_v47 }
  0xed   :  { %v952_v42 = vpop.f32.mrf.mxu0 }
  0xee   :  { %v980_v43 = vpop.f32.mrf.mxu1  ;;  %v953_v55 = vadd.f32 %v952_v42, %v951_v40  ;;  %v718_v6 = vadd.f32 %v978_v63, %v669_v59 }
  0xef   :  { %v954_v44 = vpop.f32.mrf.mxu0  ;;  %v981_v3 = vadd.f32 %v980_v43, %v979_v41 }
  0xf0   :  { %v982_v45 = vpop.f32.mrf.mxu1  ;;  %v674_v2 = vadd.f32 %v953_v55, %v848_v47 }
  0xf1   :  { %v955_v48 = vpop.f32.mrf.mxu0 }
  0xf2   :  { %v983_v49 = vpop.f32.mrf.mxu1  ;;  %v956_v7 = vadd.f32 %v955_v48, %v954_v44  ;;  %v723_v14 = vadd.f32 %v981_v3, %v674_v2 }
  0xf3   :  { %v984_v18 = vadd.f32 %v983_v49, %v982_v45 }
  0xf4   :  { %v677_v17 = vadd.f32 %v956_v7, %v848_v47 }
  0xf6   :  { %v726_v27 = vadd.f32 %v984_v18, %v677_v17 }
 0x103   :  { %v1001_v53 = vpop.f32.mrf.mxu0 }
 0x104   :  { %v1029_v54 = vpop.f32.mrf.mxu1 }
 0x105   :  { %v1002_v56 = vpop.f32.mrf.mxu0 }
 0x106   :  { %v1030_v57 = vpop.f32.mrf.mxu1  ;;  %v1003_v60 = vadd.f32 %v1002_v56, %v1001_v53 }
 0x107   :  { %v1004_v61 = vpop.f32.mrf.mxu0  ;;  %v1031_v1 = vadd.f32 %v1030_v57, %v1029_v54 }
 0x108   :  { %v1032_v62 = vpop.f32.mrf.mxu1  ;;  %v764_v0 = vadd.f32 %v1003_v60, %v715_v58 }
 0x109   :  { %v1005_v4 = vpop.f32.mrf.mxu0 }
 0x10a   :  { %v1033_v5 = vpop.f32.mrf.mxu1  ;;  %v813_v8 = vadd.f32 %v1031_v1, %v764_v0  ;;  %v1006_v9 = vadd.f32 %v1005_v4, %v1004_v61 }
 0x10b   :  { %v1007_v10 = vpop.f32.mrf.mxu0  ;;  %v1034_v13 = vadd.f32 %v1033_v5, %v1032_v62 }
 0x10c   :  { %v1035_v11 = vpop.f32.mrf.mxu1  ;;  %828 = vst.msk [vmem:[#allocation2] sm:$0xff] %vm827_vm0, %v813_v8  ;;  %v767_v12 = vadd.f32 %v1006_v9, %v718_v6 }
 0x10d   :  { %v1008_v15 = vpop.f32.mrf.mxu0 }
 0x10e   :  { %v1036_v16 = vpop.f32.mrf.mxu1  ;;  %v816_v19 = vadd.f32 %v1034_v13, %v767_v12  ;;  %v1009_v20 = vadd.f32 %v1008_v15, %v1007_v10 }
 0x10f   :  { %v1010_v21 = vpop.f32.mrf.mxu0  ;;  %v1037_v24 = vadd.f32 %v1036_v16, %v1035_v11 }
 0x110   :  { %v1038_v22 = vpop.f32.mrf.mxu1  ;;  %829 = vst.msk [vmem:[#allocation2 + $0x8] sm:$0xff] %vm827_vm0, %v816_v19  ;;  %v772_v23 = vadd.f32 %v1009_v20, %v723_v14 }
 0x111   :  { %v1011_v25 = vpop.f32.mrf.mxu0 }
 0x112   :  { %v1039_v26 = vpop.f32.mrf.mxu1  ;;  %v821_v28 = vadd.f32 %v1037_v24, %v772_v23  ;;  %v1012_v29 = vadd.f32 %v1011_v25, %v1010_v21 }
 0x113   :  { %v1040_v31 = vadd.f32 %v1039_v26, %v1038_v22 }
 0x114   :  { %830 = vst.msk [vmem:[#allocation2 + $0x10] sm:$0xff] %vm827_vm0, %v821_v28  ;;  %v775_v30 = vadd.f32 %v1012_v29, %v726_v27 }
 0x116   :  { %v824_v32 = vadd.f32 %v1040_v31, %v775_v30 }
 0x118   :  { %831 = vst.msk [vmem:[#allocation2 + $0x18] sm:$0xff] %vm827_vm0, %v824_v32 }
 0x119   :  { %1119 = shalt.err (!%p1116_p4)
}
 0x11a   :  { %s1131_s12 = smov 128   ;;  %s1132_s13 = smov 8  }
 0x11b   :  { %843 = dma.vmem_to_hbm [thread:$0]  %s838_s10, 512, %s1406_s3, [#allocation3], %s1131_s12, %s1131_s12, %s1132_s13  }
 0x11c   :  { %1128 = dma.done.wait [#allocation3], 512  }
 0x11d   :  { %1129 = vsyncadd [#allocation3], 4294966784 }
 0x11e   :  { %847 = vsyncpa [#allocation3], 1 }

</bundles_post_ra>
